<compile_context>
chip_gen: v6e
topology: v6e:2x2x1
jax: 0.10.0
libtpu: 0.0.40
codegen_flags: <defaults>
</compile_context>

<pallas_src>
import math

import jax
import jax.numpy as jnp
from jax.experimental import pallas as pl
from jax.experimental.pallas import tpu as pltpu


def _make_qact_kernel(scale):
    scale = float(scale)  # compile-time constant

    def kernel(x_ref, o_ref):
        # Compute in f32 regardless of input dtype (robust to bf16 inputs).
        y = x_ref[...].astype(jnp.float32) / jnp.float32(scale)
        # float -> int8 cast truncates toward zero, matching torch .to(int8).
        o_ref[...] = jnp.clip(y, -128.0, 127.0).astype(jnp.int8)

    return kernel


def qact(x, scale, *, max_tile_bytes=8 * 1024 * 1024):
    """int8 quantization: clamp(x / scale, -128, 127) cast to int8."""
    orig_shape = x.shape
    n = int(math.prod(orig_shape)) if orig_shape else 1
    in_bytes = jnp.dtype(x.dtype).itemsize

    # ---- Lane-dense flat layout -------------------------------------------
    # Elementwise op on a contiguous buffer: free to view the n elements as
    # (rows, width).  Prefer width in {1024, 512, 256, 128} for unmasked,
    # lane-dense int8 stores; fall back to the natural last dim (full-extent
    # block, always legal) only when n is not a multiple of 128.
    width = None
    for w in (1024, 512, 256, 128):
        if n % w == 0:
            width = w
            break
    if width is None:
        width = orig_shape[-1] if orig_shape else 1
    rows = max(1, n // width)
    x2 = x.reshape(rows, width)  # free reshape of a contiguous buffer

    # ---- Tile the row axis by bytes ---------------------------------------
    # ~max_tile_bytes of input per tile, multiple of 32 rows (int8 sublane
    # packing; also satisfies the (8,128) block constraint for partial grids).
    bytes_per_row = in_bytes * width
    cap = max(32, (max_tile_bytes // bytes_per_row) // 32 * 32)
    tile_rows = min(rows, cap)
    # Guarantee >= 2 grid steps when the array is big enough so v7x's two
    # TensorCores both get work on this purely HBM-streaming kernel.
    if tile_rows >= rows and rows >= 64:
        tile_rows = ((rows + 1) // 2 + 31) // 32 * 32
    grid = (pl.cdiv(rows, tile_rows),)

    out2 = pl.pallas_call(
        _make_qact_kernel(scale),
        out_shape=jax.ShapeDtypeStruct((rows, width), jnp.int8),
        grid=grid,
        in_specs=[pl.BlockSpec((tile_rows, width), lambda i: (i, 0))],
        out_specs=pl.BlockSpec((tile_rows, width), lambda i: (i, 0)),
        compiler_params=pltpu.CompilerParams(
            dimension_semantics=("parallel",),
            # 2 x (8 MiB input + 2 MiB int8 output) ~= 20 MiB buffers: inside
            # this 32 MiB limit, safe on v7x's 64 MiB physical VMEM, and above
            # v5e's 16 MiB scoped default.
            vmem_limit_bytes=32 * 1024 * 1024,
        ),
        cost_estimate=pl.CostEstimate(
            flops=3 * n, transcendentals=0, bytes_accessed=(in_bytes + 1) * n
        ),
    )(x2)
    return out2.reshape(orig_shape)


if __name__ == "__main__":
    # Deterministic "parameter" of the module: the quantization scale.
    SCALE = 0.05  # QAct.__init__(scale) -- a plain python float in the module.

    key = jax.random.PRNGKey(0)

    # Small activation tensor: (batch, seq, hidden) -- exercises the narrow-D
    # lane-dense repack path (D=32 -> width=512, rows=1).
    B, L, D = 2, 8, 32
    x = jax.random.normal(key, (B, L, D), dtype=jnp.float32) * 5.0
    out = jax.block_until_ready(qact(x, SCALE))
    ref = jnp.trunc(jnp.clip(x / jnp.float32(SCALE), -128.0, 127.0)).astype(jnp.int8)
    assert out.dtype == jnp.int8
    assert out.shape == (B, L, D)
    assert bool(jnp.all(out == ref))

    # Slightly larger case -- exercises the multi-step grid (>= 2 tiles, the
    # path v7x uses to shard across both TensorCores).
    B2, L2, D2 = 4, 128, 256
    x2 = jax.random.normal(jax.random.PRNGKey(1), (B2, L2, D2), jnp.float32) * 3.0
    out2 = jax.block_until_ready(qact(x2, SCALE))
    ref2 = jnp.trunc(jnp.clip(x2 / jnp.float32(SCALE), -128.0, 127.0)).astype(jnp.int8)
    assert out2.dtype == jnp.int8
    assert out2.shape == (B2, L2, D2)
    assert bool(jnp.all(out2 == ref2))

    print("KERNEL_OK")
</pallas_src>

<mosaic_0001>
module attributes {stable_mosaic.version = 11 : i64} {
  func.func @kernel(%arg0: i32, %arg1: memref<1x512xf32, #tpu.memory_space<vmem>>, %arg2: memref<1x512xi8, #tpu.memory_space<vmem>>) attributes {dimension_semantics = [#tpu.dimension_semantics<parallel>], iteration_bounds = array<i64: 1>, scalar_prefetch = 0 : i64, scratch_operands = 0 : i64, tpu.core_type = #tpu.core_type<tc>, window_params = [{transform_indices = @transform_0, window_bounds = array<i64: 1, 512>}, {transform_indices = @transform_1, window_bounds = array<i64: 1, 512>}]} {
    %c0 = arith.constant 0 : index
    %c0_0 = arith.constant 0 : index
    %0 = vector.load %arg1[%c0, %c0_0] : memref<1x512xf32, #tpu.memory_space<vmem>>, vector<1x512xf32>
    %cst = arith.constant 5.000000e-02 : f32
    %1 = vector.broadcast %cst : f32 to vector<1x512xf32>
    %2 = arith.divf %0, %1 : vector<1x512xf32>
    %cst_1 = arith.constant -1.280000e+02 : f32
    %cst_2 = arith.constant 1.270000e+02 : f32
    %3 = vector.broadcast %cst_1 : f32 to vector<1x512xf32>
    %4 = arith.maximumf %3, %2 : vector<1x512xf32>
    %5 = vector.broadcast %cst_2 : f32 to vector<1x512xf32>
    %6 = arith.minimumf %5, %4 : vector<1x512xf32>
    %7 = arith.fptosi %6 : vector<1x512xf32> to vector<1x512xi8>
    %c0_3 = arith.constant 0 : index
    %c0_4 = arith.constant 0 : index
    %8 = vector.load %arg2[%c0_3, %c0_4] : memref<1x512xi8, #tpu.memory_space<vmem>>, vector<1x512xi8>
    tpu.vector_store %arg2[%c0_3, %c0_4], %7 {strides = array<i32>} : memref<1x512xi8, #tpu.memory_space<vmem>>, vector<1x512xi8>,
    return
  }
  func.func @transform_0(%arg0: i32) -> (i32, i32) {
    %c0_i32 = arith.constant 0 : i32
    %c0_i32_0 = arith.constant 0 : i32
    return %arg0, %c0_i32 : i32, i32
  }
  func.func @transform_1(%arg0: i32) -> (i32, i32) {
    %c0_i32 = arith.constant 0 : i32
    %c0_i32_0 = arith.constant 0 : i32
    return %arg0, %c0_i32 : i32, i32
  }
}

</mosaic_0001>

<bundles_post_ra>
// kernel: tpu_custom_call.1
= control target key start
LH: loop header
LB: loop body
LE: loop exit
PB: predicated region body
PF: predicated region fallthrough
CT: control target
= control target key end

     0   :  { %6 = vsyncpa [#allocation3], 0  ;;  %s193_s0 = inlined_call_operand.hbm [shape: f32[1,512], index: 0, kind: input, shape index: {}]   ;;  %s194_s1 = inlined_call_operand.hbm [shape: s8[1,512], index: 1, kind: output, shape index: {}]  }
   0x1   :  { %7 = vsyncpa [#allocation4], 0  ;;  %s162_s6 = smov [#allocation2]  }
   0x2   :  { %s14_s7 = sshll.u32 %s162_s6, 4  ;;  %s15_s7 = int_to_ptr.vmem [resolvable:$true] %s14_s7 }
   0x3   :  { %s126_s8 = scalar_lea.vmem %s15_s7, 64  ;;  %p131_p1 = scmp.lt.s32.totalorder %s15_s7, %s15_s7 }
   0x4   :  { %p127_p0 = scmp.ne.s32.totalorder %s15_s7, %s126_s8  ;;  %p132_p2 = scmp.lt.s32.totalorder %s126_s8, %s126_s8 }
   0x6   :  { %p133_p3 = por %p132_p2, %p131_p1 }
   0x8   :  { %p134_p4 = pnand %p133_p3, %p127_p0 }
   0xa   :  { %137 = shalt.err (!%p134_p4)
}
   0xb   :  { %17 = dma.hbm_to_vmem [thread:$0]  %s193_s0, 64, %s15_s7, [#allocation3]  }
   0xc   :  { %158 = dma.done.wait [#allocation3], 64  }
   0xd   :  { %159 = vsyncadd [#allocation3], 4294967232  ;;  %v29_v0 = vlaneseq  ;;  %v21_v1 = vld [vmem:[#allocation2] sm:$0xf]  ;;  %v163_v4 = vmov 1966171168  }
   0xe   :  { %v23_v3 = vmul.f32 20.0, %v21_v1  ;;  %v56_v5 = vunpack.c.l.s4 %v163_v4  ;;  %vm77_vm0 = vcmask 1040384   ;;  %vm78_vm1 = vsmask.f32 0  ;;  %s164_s0 = smov [#allocation5]  }
   0xf   :  { %v30_v2 = vshrl.u32 %v29_v0, 7  ;;  %vm80_vm2 = vcmask 1041409   ;;  %vm81_vm3 = vsmask.f32 1024  ;;  %vm178_vm4 = vmand %vm77_vm0, %vm78_vm1  ;;  %vm84_vm6 = vcmask 1042434   ;;  %s101_s11 = sshll.u32 %s164_s0, 4  ;;  %s102_s11 = int_to_ptr.vmem [resolvable:$true] %s101_s11 }
  0x10   :  { %v110_v6 = vclampa-f32 %v23_v3, -128, 127  ;;  %v57_v12 = vunpack.c.0.s8 %v56_v5  ;;  %vm182_vm5 = vmand %vm80_vm2, %vm81_vm3  ;;  %vm85_vm7 = vsmask.f32 2048  ;;  %vm88_vm10 = vcmask 1043459   ;;  %s138_s12 = scalar_lea.vmem %s102_s11, 64  ;;  %p143_p6 = scmp.lt.s32.totalorder %s102_s11, %s102_s11 }
  0x11   :  { %v31_v7 = vsub.s32 0, %v30_v2  ;;  %v35_v9 = vsub.s32 1, %v30_v2  ;;  %v39_v10 = vsub.s32 2, %v30_v2  ;;  %v43_v11 = vsub.s32 3, %v30_v2  ;;  %vm83_vm8 = vmor %vm182_vm5, %vm178_vm4  ;;  %v92_v30 = vld [vmem:[#allocation5] sm:$0xf]  ;;  %p139_p5 = scmp.ne.s32.totalorder %s102_s11, %s138_s12  ;;  %p144_p7 = scmp.lt.s32.totalorder %s138_s12, %s138_s12 }
  0x12   :  { %v113_v8 = vtrunc.f32 %v110_v6  ;;  %v60_v20 = vsub.s32 %v57_v12, %v30_v2  ;;  %vm86_vm9 = vmand %vm84_vm6, %vm85_vm7  ;;  %vm89_vm11 = vsmask.f32 3072 }
  0x13   :  { %vm87_vm12 = vmor %vm86_vm9, %vm83_vm8  ;;  %p145_p8 = por %p144_p7, %p143_p6 }
  0x14   :  { %v114_v14 = vcvt.f32.s32 %v113_v8  ;;  %vm90_vm13 = vmand %vm88_vm10, %vm89_vm11 }
  0x15   :  { %vm91_vm14 = vmor %vm90_vm13, %vm87_vm12  ;;  %p146_p9 = pnand %p145_p8, %p139_p5 }
  0x16   :  { %v32_v16 = vrot.slane %v114_v14, %v31_v7  ;;  %v36_v17 = vrot.slane %v114_v14, %v35_v9  ;;  %v40_v18 = vrot.slane %v114_v14, %v39_v10  ;;  %v44_v19 = vrot.slane %v114_v14, %v43_v11 }
  0x18   :  { %v45_v21 = vpack.c.b16 %v32_v16, %v32_v16  ;;  %v47_v22 = vpack.c.b16 %v36_v17, %v36_v17  ;;  %v49_v23 = vpack.c.b16 %v40_v18, %v40_v18  ;;  %v51_v24 = vpack.c.b16 %v44_v19, %v44_v19 }
  0x1a   :  { %v111_v25 = vpack.c.b8 %v47_v22, %v45_v21  ;;  %v112_v26 = vpack.c.b8 %v51_v24, %v49_v23 }
  0x1c   :  { %v61_v27 = vrot.slane %v111_v25, %v60_v20  ;;  %v68_v28 = vrot.slane %v112_v26, %v60_v20 }
  0x1e   :  { %v69_v29 = vcombine.low %v61_v27, %v68_v28 }
  0x20   :  { %v76_v31 = vrot.slane %v69_v29, %v60_v20 }
  0x22   :  { %v93_v32 = vsel %vm91_vm14, %v76_v31, %v92_v30 }
  0x23   :  { %94 = vst [vmem:[#allocation5] sm:$0xf] %v93_v32 }
  0x24   :  { %149 = shalt.err (!%p146_p9)
}
  0x25   :  { %104 = dma.vmem_to_hbm [thread:$0]  %s102_s11, 64, %s194_s1, [#allocation4]  }
  0x26   :  { %160 = dma.done.wait [#allocation4], 64  }
  0x27   :  { %161 = vsyncadd [#allocation4], 4294967232 }
  0x28   :  { %108 = vsyncpa [#allocation3], 1 }
  0x29   :  { %109 = vsyncpa [#allocation4], 1 }

</bundles_post_ra>
